<compile_context>
chip_gen: v5e
topology: v5e:2x2
jax: 0.10.0
libtpu: 0.0.40
codegen_flags: <defaults>
</compile_context>

<pallas_src>
import functools

import jax
import jax.numpy as jnp
from jax.experimental import pallas as pl
from jax.experimental.pallas import tpu as pltpu


def _round_up(x, m):
    return ((x + m - 1) // m) * m


def _actor_kernel(x_ref, w1_ref, b1_ref, w2_ref, b2_ref, w3_ref, b3_ref,
                  o_ref, *, max_action):
    # x tile: (TB, in_dim).  Cast to bf16 only at the MXU boundary (skip the
    # cast entirely if the caller already supplies bf16 activations); all
    # accumulation and elementwise math stays f32.
    x = x_ref[...]
    if x.dtype != jnp.bfloat16:
        x = x.astype(jnp.bfloat16)

    # Layer 1: relu(x @ W1 + b1)
    h1 = jnp.dot(x, w1_ref[...], preferred_element_type=jnp.float32)
    h1 = jnp.maximum(h1 + b1_ref[...], 0.0)

    # Layer 2: relu(h1 @ W2 + b2)
    h2 = jnp.dot(h1.astype(jnp.bfloat16), w2_ref[...],
                 preferred_element_type=jnp.float32)
    h2 = jnp.maximum(h2 + b2_ref[...], 0.0)

    # Layer 3: max_action * tanh(h2 @ W3 + b3), written at the true out_dim
    # (no lane padding -> no HBM write amplification).
    logits = jnp.dot(h2.astype(jnp.bfloat16), w3_ref[...],
                     preferred_element_type=jnp.float32)
    logits = logits + b3_ref[...]
    o_ref[...] = (max_action * jnp.tanh(logits)).astype(o_ref.dtype)


def _weight_spec(shape, single_buffer):
    if single_buffer:
        # Constant blocks never change across grid steps: one pipeline buffer
        # is enough, halving resident weight VMEM vs default double-buffering.
        return pl.BlockSpec(shape, lambda i: (0, 0),
                            pipeline_mode=pl.Buffered(1))
    return pl.BlockSpec(shape, lambda i: (0, 0))


# Cache for whether pipeline_mode=pl.Buffered(1) is accepted by this jax.
_SINGLE_BUFFER_OK = {"value": None}


def actor_forward(x, params, max_action, *, block_b=1024):
    """Fused Actor forward.

    x: (B, in_dim) f32 (or bf16).  params: (W1, b1, W2, b2, W3, b3) with
    weights stored as (in_features, out_features) and biases as
    (1, out_features).  Returns (B, out_dim) f32.

    Numerics note: weights/activations feed the MXU in bf16 (f32 accumulation),
    so expect ~1e-2 relative error vs a pure-f32 PyTorch actor.
    """
    w1, b1, w2, b2, w3, b3 = params
    batch, in_dim = x.shape
    n_hidden = w1.shape[1]
    out_dim = w3.shape[1]

    # --- lane-dense hidden: zero-pad n_hidden to a multiple of 128.  Padded
    #     columns get zero weights and zero bias => relu gives exact zeros that
    #     contribute nothing downstream.  (Production: hoist to init time.)
    h_pad = _round_up(n_hidden, 128)
    if h_pad != n_hidden:
        w1 = jnp.zeros((in_dim, h_pad), w1.dtype).at[:, :n_hidden].set(w1)
        b1 = jnp.zeros((1, h_pad), b1.dtype).at[:, :n_hidden].set(b1)
        w2 = jnp.zeros((h_pad, h_pad), w2.dtype).at[:n_hidden, :n_hidden].set(w2)
        b2 = jnp.zeros((1, h_pad), b2.dtype).at[:, :n_hidden].set(b2)
        w3 = jnp.zeros((h_pad, out_dim), w3.dtype).at[:n_hidden, :].set(w3)

    # bf16 weights for the MXU (halves weight DMA + resident VMEM); biases f32.
    w1_b = w1.astype(jnp.bfloat16)
    w2_b = w2.astype(jnp.bfloat16)
    w3_b = w3.astype(jnp.bfloat16)
    b1_f = b1.astype(jnp.float32)
    b2_f = b2.astype(jnp.float32)
    b3_f = b3.astype(jnp.float32)

    # --- batch tile: as large as VMEM allows (per-grid-step fixed cost
    #     ~0.35us dominates small tiles) but split into >=2 steps whenever
    #     batch spans more than one tile so "parallel" shards across both
    #     v7x TensorCores.
    tb = min(block_b, _round_up((batch + 1) // 2, 8))
    if batch < tb:
        tb = batch  # single block whose dims equal the full array dims

    # --- VMEM budget / limit (no double-hedging; stay well under v7x 64 MiB).
    try:
        vmem_physical = int(pltpu.get_tpu_info().vmem_capacity_bytes)
    except Exception:
        vmem_physical = 64 * 1024 * 1024
    vmem_cap = min(40 * 1024 * 1024, (vmem_physical * 5) // 8)

    weight_bytes = 2 * (in_dim * h_pad + h_pad * h_pad + h_pad * out_dim)  # bf16
    bias_bytes = 4 * (2 * h_pad + out_dim)                                 # f32
    x_item = x.dtype.itemsize
    per_row_bytes = (2 * in_dim * x_item      # x (double-buffered)
                     + 2 * out_dim * 4        # out (double-buffered)
                     + 3 * h_pad * 4)         # live h1/h2 + slack
    act_budget = vmem_cap - 2 * weight_bytes - 2 * bias_bytes - (4 << 20)
    if act_budget >= per_row_bytes * 8:
        tb = min(tb, max(8, (act_budget // per_row_bytes) // 8 * 8))

    grid = (pl.cdiv(batch, tb),)  # partial last block is masked by Pallas

    vmem_est = 2 * weight_bytes + 2 * bias_bytes + tb * per_row_bytes
    vmem_limit = int(min(max(vmem_est + (8 << 20), 16 * 1024 * 1024), vmem_cap))

    cost = pl.CostEstimate(
        flops=2 * batch * (in_dim * h_pad + h_pad * h_pad + h_pad * out_dim),
        transcendentals=batch * out_dim,          # real tanh count, not padded
        bytes_accessed=(batch * in_dim * x_item
                        + weight_bytes + bias_bytes
                        + batch * out_dim * 4),
    )

    kernel = functools.partial(_actor_kernel, max_action=float(max_action))

    def run(single_buffer_weights):
        in_specs = [pl.BlockSpec((tb, in_dim), lambda i: (i, 0))]
        for arr in (w1_b, b1_f, w2_b, b2_f, w3_b, b3_f):
            in_specs.append(_weight_spec(arr.shape, single_buffer_weights))
        return pl.pallas_call(
            kernel,
            out_shape=jax.ShapeDtypeStruct((batch, out_dim), jnp.float32),
            grid_spec=pltpu.PrefetchScalarGridSpec(
                num_scalar_prefetch=0,
                grid=grid,
                in_specs=in_specs,
                out_specs=pl.BlockSpec((tb, out_dim), lambda i: (i, 0)),
            ),
            compiler_params=pltpu.CompilerParams(
                dimension_semantics=("parallel",),
                vmem_limit_bytes=vmem_limit,
            ),
            cost_estimate=cost,
        )(x, w1_b, b1_f, w2_b, b2_f, w3_b, b3_f)

    if _SINGLE_BUFFER_OK["value"] is None:
        try:
            out = run(True)
            _SINGLE_BUFFER_OK["value"] = True
            return out
        except Exception:
            # pipeline_mode=pl.Buffered(1) not accepted by this jax build; use
            # default (double-buffered) constant blocks instead.
            _SINGLE_BUFFER_OK["value"] = False
    return run(_SINGLE_BUFFER_OK["value"])


def init_actor_params(key, actor_input_dim, actor_output_dim, n_hidden):
    """Deterministic init mimicking nn.Linear's U(-1/sqrt(fan_in), 1/sqrt(fan_in))."""
    def linear_init(k, fan_in, fan_out):
        kw, kb = jax.random.split(k)
        bound = 1.0 / jnp.sqrt(fan_in)
        w = jax.random.uniform(kw, (fan_in, fan_out), jnp.float32, -bound, bound)
        b = jax.random.uniform(kb, (1, fan_out), jnp.float32, -bound, bound)
        return w, b

    k1, k2, k3 = jax.random.split(key, 3)
    w1, b1 = linear_init(k1, actor_input_dim, n_hidden)
    w2, b2 = linear_init(k2, n_hidden, n_hidden)
    w3, b3 = linear_init(k3, n_hidden, actor_output_dim)
    return (w1, b1, w2, b2, w3, b3)


def actor_forward_ref(x, params, max_action):
    """Pure-JAX f32 reference for correctness checking."""
    w1, b1, w2, b2, w3, b3 = params
    h1 = jnp.maximum(x @ w1 + b1, 0.0)
    h2 = jnp.maximum(h1 @ w2 + b2, 0.0)
    return max_action * jnp.tanh(h2 @ w3 + b3)


# TODO(synk): entropy_reg() (not part of Module.forward) is not implemented here.

if __name__ == "__main__":
    # Small shapes consistent with the module's forward (state -> action MLP).
    batch = 8
    actor_input_dim = 16
    actor_output_dim = 8
    n_hidden = 32
    max_action = 2.0

    key = jax.random.PRNGKey(0)
    k_params, k_x = jax.random.split(key)

    params = init_actor_params(k_params, actor_input_dim, actor_output_dim, n_hidden)
    x = jax.random.normal(k_x, (batch, actor_input_dim), jnp.float32)

    out = actor_forward(x, params, max_action)
    out = jax.block_until_ready(out)

    ref = actor_forward_ref(x, params, max_action)
    assert out.shape == (batch, actor_output_dim)
    # bf16 weights feed the MXU (f32 accumulation), so allow a slightly looser
    # tolerance than a pure-f32 path.
    assert jnp.allclose(out, ref, atol=3e-2, rtol=3e-2), "mismatch vs reference"

    # Also exercise a batch that is not a multiple of the tile size
    # (partial last grid block, two grid steps).
    x2 = jax.random.normal(jax.random.PRNGKey(1), (13, actor_input_dim), jnp.float32)
    out2 = jax.block_until_ready(actor_forward(x2, params, max_action))
    ref2 = actor_forward_ref(x2, params, max_action)
    assert out2.shape == (13, actor_output_dim)
    assert jnp.allclose(out2, ref2, atol=3e-2, rtol=3e-2), "mismatch vs reference (ragged batch)"

    print("KERNEL_OK")
</pallas_src>

<mosaic_0001>
module attributes {stable_mosaic.version = 11 : i64} {
  func.func @_actor_kernel(%arg0: i32, %arg1: memref<8x16xf32, #tpu.memory_space<vmem>>, %arg2: memref<16x128xbf16, #tpu.memory_space<vmem>>, %arg3: memref<1x128xf32, #tpu.memory_space<vmem>>, %arg4: memref<128x128xbf16, #tpu.memory_space<vmem>>, %arg5: memref<1x128xf32, #tpu.memory_space<vmem>>, %arg6: memref<128x8xbf16, #tpu.memory_space<vmem>>, %arg7: memref<1x8xf32, #tpu.memory_space<vmem>>, %arg8: memref<8x8xf32, #tpu.memory_space<vmem>>) attributes {dimension_semantics = [#tpu.dimension_semantics<parallel>], iteration_bounds = array<i64: 1>, scalar_prefetch = 0 : i64, scratch_operands = 0 : i64, tpu.core_type = #tpu.core_type<tc>, window_params = [{transform_indices = @transform_0, window_bounds = array<i64: 8, 16>}, {pipeline_mode = #tpu.pipeline_mode<synchronous>, transform_indices = @transform_1, window_bounds = array<i64: 16, 128>}, {pipeline_mode = #tpu.pipeline_mode<synchronous>, transform_indices = @transform_2, window_bounds = array<i64: 1, 128>}, {pipeline_mode = #tpu.pipeline_mode<synchronous>, transform_indices = @transform_3, window_bounds = array<i64: 128, 128>}, {pipeline_mode = #tpu.pipeline_mode<synchronous>, transform_indices = @transform_4, window_bounds = array<i64: 1, 128>}, {pipeline_mode = #tpu.pipeline_mode<synchronous>, transform_indices = @transform_5, window_bounds = array<i64: 128, 8>}, {pipeline_mode = #tpu.pipeline_mode<synchronous>, transform_indices = @transform_6, window_bounds = array<i64: 1, 8>}, {transform_indices = @transform_7, window_bounds = array<i64: 8, 8>}]} {
    %c0 = arith.constant 0 : index
    %c0_0 = arith.constant 0 : index
    %0 = vector.load %arg1[%c0, %c0_0] : memref<8x16xf32, #tpu.memory_space<vmem>>, vector<8x16xf32>
    %1 = arith.truncf %0 : vector<8x16xf32> to vector<8x16xbf16>
    %c0_1 = arith.constant 0 : index
    %c0_2 = arith.constant 0 : index
    %2 = vector.load %arg2[%c0_1, %c0_2] : memref<16x128xbf16, #tpu.memory_space<vmem>>, vector<16x128xbf16>
    %cst = arith.constant dense<0.000000e+00> : vector<8x128xf32>
    %3 = tpu.matmul %1, %2, %cst {dimension_numbers = #tpu.dot_dimension_numbers<[1], [0], [0], [1], [0, 0, 1, 1], [], []>} : vector<8x16xbf16>, vector<16x128xbf16>, vector<8x128xf32> -> vector<8x128xf32>
    %c0_3 = arith.constant 0 : index
    %c0_4 = arith.constant 0 : index
    %4 = vector.load %arg3[%c0_3, %c0_4] : memref<1x128xf32, #tpu.memory_space<vmem>>, vector<1x128xf32>
    %5 = vector.broadcast %4 : vector<1x128xf32> to vector<8x128xf32>
    %6 = arith.addf %3, %5 : vector<8x128xf32>
    %cst_5 = arith.constant 0.000000e+00 : f32
    %7 = vector.broadcast %cst_5 : f32 to vector<8x128xf32>
    %8 = arith.maximumf %6, %7 : vector<8x128xf32>
    %9 = arith.truncf %8 : vector<8x128xf32> to vector<8x128xbf16>
    %c0_6 = arith.constant 0 : index
    %c0_7 = arith.constant 0 : index
    %10 = vector.load %arg4[%c0_6, %c0_7] : memref<128x128xbf16, #tpu.memory_space<vmem>>, vector<128x128xbf16>
    %cst_8 = arith.constant dense<0.000000e+00> : vector<8x128xf32>
    %11 = tpu.matmul %9, %10, %cst_8 {dimension_numbers = #tpu.dot_dimension_numbers<[1], [0], [0], [1], [0, 0, 1, 1], [], []>} : vector<8x128xbf16>, vector<128x128xbf16>, vector<8x128xf32> -> vector<8x128xf32>
    %c0_9 = arith.constant 0 : index
    %c0_10 = arith.constant 0 : index
    %12 = vector.load %arg5[%c0_9, %c0_10] : memref<1x128xf32, #tpu.memory_space<vmem>>, vector<1x128xf32>
    %13 = vector.broadcast %12 : vector<1x128xf32> to vector<8x128xf32>
    %14 = arith.addf %11, %13 : vector<8x128xf32>
    %cst_11 = arith.constant 0.000000e+00 : f32
    %15 = vector.broadcast %cst_11 : f32 to vector<8x128xf32>
    %16 = arith.maximumf %14, %15 : vector<8x128xf32>
    %17 = arith.truncf %16 : vector<8x128xf32> to vector<8x128xbf16>
    %c0_12 = arith.constant 0 : index
    %c0_13 = arith.constant 0 : index
    %18 = vector.load %arg6[%c0_12, %c0_13] : memref<128x8xbf16, #tpu.memory_space<vmem>>, vector<128x8xbf16>
    %cst_14 = arith.constant dense<0.000000e+00> : vector<8x8xf32>
    %19 = tpu.matmul %17, %18, %cst_14 {dimension_numbers = #tpu.dot_dimension_numbers<[1], [0], [0], [1], [0, 0, 1, 1], [], []>} : vector<8x128xbf16>, vector<128x8xbf16>, vector<8x8xf32> -> vector<8x8xf32>
    %c0_15 = arith.constant 0 : index
    %c0_16 = arith.constant 0 : index
    %20 = vector.load %arg7[%c0_15, %c0_16] : memref<1x8xf32, #tpu.memory_space<vmem>>, vector<1x8xf32>
    %21 = vector.broadcast %20 : vector<1x8xf32> to vector<8x8xf32>
    %22 = arith.addf %19, %21 : vector<8x8xf32>
    %23 = math.tanh %22 : vector<8x8xf32>
    %cst_17 = arith.constant 2.000000e+00 : f32
    %24 = vector.broadcast %cst_17 : f32 to vector<8x8xf32>
    %25 = arith.mulf %24, %23 : vector<8x8xf32>
    %c0_18 = arith.constant 0 : index
    %c0_19 = arith.constant 0 : index
    %26 = vector.load %arg8[%c0_18, %c0_19] : memref<8x8xf32, #tpu.memory_space<vmem>>, vector<8x8xf32>
    tpu.vector_store %arg8[%c0_18, %c0_19], %25 {strides = array<i32>} : memref<8x8xf32, #tpu.memory_space<vmem>>, vector<8x8xf32>,
    return
  }
  func.func @transform_0(%arg0: i32) -> (i32, i32) {
    %c0_i32 = arith.constant 0 : i32
    %c0_i32_0 = arith.constant 0 : i32
    return %arg0, %c0_i32 : i32, i32
  }
  func.func @transform_1(%arg0: i32) -> (i32, i32) {
    %c0_i32 = arith.constant 0 : i32
    %c0_i32_0 = arith.constant 0 : i32
    %c0_i32_1 = arith.constant 0 : i32
    return %c0_i32, %c0_i32_0 : i32, i32
  }
  func.func @transform_2(%arg0: i32) -> (i32, i32) {
    %c0_i32 = arith.constant 0 : i32
    %c0_i32_0 = arith.constant 0 : i32
    %c0_i32_1 = arith.constant 0 : i32
    return %c0_i32, %c0_i32_0 : i32, i32
  }
  func.func @transform_3(%arg0: i32) -> (i32, i32) {
    %c0_i32 = arith.constant 0 : i32
    %c0_i32_0 = arith.constant 0 : i32
    %c0_i32_1 = arith.constant 0 : i32
    return %c0_i32, %c0_i32_0 : i32, i32
  }
  func.func @transform_4(%arg0: i32) -> (i32, i32) {
    %c0_i32 = arith.constant 0 : i32
    %c0_i32_0 = arith.constant 0 : i32
    %c0_i32_1 = arith.constant 0 : i32
    return %c0_i32, %c0_i32_0 : i32, i32
  }
  func.func @transform_5(%arg0: i32) -> (i32, i32) {
    %c0_i32 = arith.constant 0 : i32
    %c0_i32_0 = arith.constant 0 : i32
    %c0_i32_1 = arith.constant 0 : i32
    return %c0_i32, %c0_i32_0 : i32, i32
  }
  func.func @transform_6(%arg0: i32) -> (i32, i32) {
    %c0_i32 = arith.constant 0 : i32
    %c0_i32_0 = arith.constant 0 : i32
    %c0_i32_1 = arith.constant 0 : i32
    return %c0_i32, %c0_i32_0 : i32, i32
  }
  func.func @transform_7(%arg0: i32) -> (i32, i32) {
    %c0_i32 = arith.constant 0 : i32
    %c0_i32_0 = arith.constant 0 : i32
    return %arg0, %c0_i32 : i32, i32
  }
}

module attributes {stable_mosaic.version = 11 : i64} {
  func.func @_actor_kernel(%arg0: i32, %arg1: memref<8x16xf32, #tpu.memory_space<vmem>>, %arg2: memref<16x128xbf16, #tpu.memory_space<vmem>>, %arg3: memref<1x128xf32, #tpu.memory_space<vmem>>, %arg4: memref<128x128xbf16, #tpu.memory_space<vmem>>, %arg5: memref<1x128xf32, #tpu.memory_space<vmem>>, %arg6: memref<128x8xbf16, #tpu.memory_space<vmem>>, %arg7: memref<1x8xf32, #tpu.memory_space<vmem>>, %arg8: memref<8x8xf32, #tpu.memory_space<vmem>>) attributes {dimension_semantics = [#tpu.dimension_semantics<parallel>], iteration_bounds = array<i64: 1>, scalar_prefetch = 0 : i64, scratch_operands = 0 : i64, tpu.core_type = #tpu.core_type<tc>, window_params = [{transform_indices = @transform_0, window_bounds = array<i64: 8, 16>}, {pipeline_mode = #tpu.pipeline_mode<synchronous>, transform_indices = @transform_1, window_bounds = array<i64: 16, 128>}, {pipeline_mode = #tpu.pipeline_mode<synchronous>, transform_indices = @transform_2, window_bounds = array<i64: 1, 128>}, {pipeline_mode = #tpu.pipeline_mode<synchronous>, transform_indices = @transform_3, window_bounds = array<i64: 128, 128>}, {pipeline_mode = #tpu.pipeline_mode<synchronous>, transform_indices = @transform_4, window_bounds = array<i64: 1, 128>}, {pipeline_mode = #tpu.pipeline_mode<synchronous>, transform_indices = @transform_5, window_bounds = array<i64: 128, 8>}, {pipeline_mode = #tpu.pipeline_mode<synchronous>, transform_indices = @transform_6, window_bounds = array<i64: 1, 8>}, {transform_indices = @transform_7, window_bounds = array<i64: 8, 8>}]} {
    %c0 = arith.constant 0 : index
    %c0_0 = arith.constant 0 : index
    %0 = vector.load %arg1[%c0, %c0_0] : memref<8x16xf32, #tpu.memory_space<vmem>>, vector<8x16xf32>
    %1 = arith.truncf %0 : vector<8x16xf32> to vector<8x16xbf16>
    %c0_1 = arith.constant 0 : index
    %c0_2 = arith.constant 0 : index
    %2 = vector.load %arg2[%c0_1, %c0_2] : memref<16x128xbf16, #tpu.memory_space<vmem>>, vector<16x128xbf16>
    %cst = arith.constant dense<0.000000e+00> : vector<8x128xf32>
    %3 = tpu.matmul %1, %2, %cst {dimension_numbers = #tpu.dot_dimension_numbers<[1], [0], [0], [1], [0, 0, 1, 1], [], []>} : vector<8x16xbf16>, vector<16x128xbf16>, vector<8x128xf32> -> vector<8x128xf32>
    %c0_3 = arith.constant 0 : index
    %c0_4 = arith.constant 0 : index
    %4 = vector.load %arg3[%c0_3, %c0_4] : memref<1x128xf32, #tpu.memory_space<vmem>>, vector<1x128xf32>
    %5 = vector.broadcast %4 : vector<1x128xf32> to vector<8x128xf32>
    %6 = arith.addf %3, %5 : vector<8x128xf32>
    %cst_5 = arith.constant 0.000000e+00 : f32
    %7 = vector.broadcast %cst_5 : f32 to vector<8x128xf32>
    %8 = arith.maximumf %6, %7 : vector<8x128xf32>
    %9 = arith.truncf %8 : vector<8x128xf32> to vector<8x128xbf16>
    %c0_6 = arith.constant 0 : index
    %c0_7 = arith.constant 0 : index
    %10 = vector.load %arg4[%c0_6, %c0_7] : memref<128x128xbf16, #tpu.memory_space<vmem>>, vector<128x128xbf16>
    %cst_8 = arith.constant dense<0.000000e+00> : vector<8x128xf32>
    %11 = tpu.matmul %9, %10, %cst_8 {dimension_numbers = #tpu.dot_dimension_numbers<[1], [0], [0], [1], [0, 0, 1, 1], [], []>} : vector<8x128xbf16>, vector<128x128xbf16>, vector<8x128xf32> -> vector<8x128xf32>
    %c0_9 = arith.constant 0 : index
    %c0_10 = arith.constant 0 : index
    %12 = vector.load %arg5[%c0_9, %c0_10] : memref<1x128xf32, #tpu.memory_space<vmem>>, vector<1x128xf32>
    %13 = vector.broadcast %12 : vector<1x128xf32> to vector<8x128xf32>
    %14 = arith.addf %11, %13 : vector<8x128xf32>
    %cst_11 = arith.constant 0.000000e+00 : f32
    %15 = vector.broadcast %cst_11 : f32 to vector<8x128xf32>
    %16 = arith.maximumf %14, %15 : vector<8x128xf32>
    %17 = arith.truncf %16 : vector<8x128xf32> to vector<8x128xbf16>
    %c0_12 = arith.constant 0 : index
    %c0_13 = arith.constant 0 : index
    %18 = vector.load %arg6[%c0_12, %c0_13] : memref<128x8xbf16, #tpu.memory_space<vmem>>, vector<128x8xbf16>
    %cst_14 = arith.constant dense<0.000000e+00> : vector<8x8xf32>
    %19 = tpu.matmul %17, %18, %cst_14 {dimension_numbers = #tpu.dot_dimension_numbers<[1], [0], [0], [1], [0, 0, 1, 1], [], []>} : vector<8x128xbf16>, vector<128x8xbf16>, vector<8x8xf32> -> vector<8x8xf32>
    %c0_15 = arith.constant 0 : index
    %c0_16 = arith.constant 0 : index
    %20 = vector.load %arg7[%c0_15, %c0_16] : memref<1x8xf32, #tpu.memory_space<vmem>>, vector<1x8xf32>
    %21 = vector.broadcast %20 : vector<1x8xf32> to vector<8x8xf32>
    %22 = arith.addf %19, %21 : vector<8x8xf32>
    %23 = math.tanh %22 : vector<8x8xf32>
    %cst_17 = arith.constant 2.000000e+00 : f32
    %24 = vector.broadcast %cst_17 : f32 to vector<8x8xf32>
    %25 = arith.mulf %24, %23 : vector<8x8xf32>
    %c0_18 = arith.constant 0 : index
    %c0_19 = arith.constant 0 : index
    %26 = vector.load %arg8[%c0_18, %c0_19] : memref<8x8xf32, #tpu.memory_space<vmem>>, vector<8x8xf32>
    tpu.vector_store %arg8[%c0_18, %c0_19], %25 {strides = array<i32>} : memref<8x8xf32, #tpu.memory_space<vmem>>, vector<8x8xf32>,
    return
  }
  func.func @transform_0(%arg0: i32) -> (i32, i32) {
    %c0_i32 = arith.constant 0 : i32
    %c0_i32_0 = arith.constant 0 : i32
    return %arg0, %c0_i32 : i32, i32
  }
  func.func @transform_1(%arg0: i32) -> (i32, i32) {
    %c0_i32 = arith.constant 0 : i32
    %c0_i32_0 = arith.constant 0 : i32
    %c0_i32_1 = arith.constant 0 : i32
    return %c0_i32, %c0_i32_0 : i32, i32
  }
  func.func @transform_2(%arg0: i32) -> (i32, i32) {
    %c0_i32 = arith.constant 0 : i32
    %c0_i32_0 = arith.constant 0 : i32
    %c0_i32_1 = arith.constant 0 : i32
    return %c0_i32, %c0_i32_0 : i32, i32
  }
  func.func @transform_3(%arg0: i32) -> (i32, i32) {
    %c0_i32 = arith.constant 0 : i32
    %c0_i32_0 = arith.constant 0 : i32
    %c0_i32_1 = arith.constant 0 : i32
    return %c0_i32, %c0_i32_0 : i32, i32
  }
  func.func @transform_4(%arg0: i32) -> (i32, i32) {
    %c0_i32 = arith.constant 0 : i32
    %c0_i32_0 = arith.constant 0 : i32
    %c0_i32_1 = arith.constant 0 : i32
    return %c0_i32, %c0_i32_0 : i32, i32
  }
  func.func @transform_5(%arg0: i32) -> (i32, i32) {
    %c0_i32 = arith.constant 0 : i32
    %c0_i32_0 = arith.constant 0 : i32
    %c0_i32_1 = arith.constant 0 : i32
    return %c0_i32, %c0_i32_0 : i32, i32
  }
  func.func @transform_6(%arg0: i32) -> (i32, i32) {
    %c0_i32 = arith.constant 0 : i32
    %c0_i32_0 = arith.constant 0 : i32
    %c0_i32_1 = arith.constant 0 : i32
    return %c0_i32, %c0_i32_0 : i32, i32
  }
  func.func @transform_7(%arg0: i32) -> (i32, i32) {
    %c0_i32 = arith.constant 0 : i32
    %c0_i32_0 = arith.constant 0 : i32
    return %arg0, %c0_i32 : i32, i32
  }
}

</mosaic_0001>

<bundles_post_ra>
// kernel: tpu_custom_call.1
= control target key start
LH: loop header
LB: loop body
LE: loop exit
PB: predicated region body
PF: predicated region fallthrough
CT: control target
= control target key end

     0   :  { %12 = vsyncpa [#allocation3], 0  ;;  %s562_s0 = inlined_call_operand.hbm [shape: f32[8,16], index: 0, kind: input, shape index: {}]   ;;  %s563_s1 = inlined_call_operand.hbm [shape: bf16[16,128], index: 1, kind: input, shape index: {}]   ;;  %s564_s2 = inlined_call_operand.vmem [shape: f32[1,128], index: 2, kind: input, shape index: {}]   ;;  %s565_s3 = inlined_call_operand.vmem [shape: bf16[128,128], index: 3, kind: input, shape index: {}]   ;;  %s566_s4 = inlined_call_operand.vmem [shape: f32[1,128], index: 4, kind: input, shape index: {}]   ;;  %s567_s5 = inlined_call_operand.vmem [shape: bf16[128,8], index: 5, kind: input, shape index: {}]   ;;  %s568_s6 = inlined_call_operand.vmem [shape: f32[1,8], index: 6, kind: input, shape index: {}]   ;;  %s569_s7 = inlined_call_operand.hbm [shape: f32[8,8], index: 7, kind: output, shape index: {}]  }
   0x1   :  { %13 = vsyncpa [#allocation6], 0 }
   0x2   :  { %14 = vsyncpa [#allocation4], 0  ;;  %s20_s26 = sshll.u32 %s562_s0, 4  ;;  %s451_s27 = smov [#allocation2]   ;;  %s21_s26 = int_to_ptr.hbm [resolvable:$true] %s20_s26 }
   0x3   :  { %s22_s28 = sshll.u32 %s451_s27, 4  ;;  %s30_s8 = sshll.u32 %s563_s1, 4  ;;  %s23_s28 = int_to_ptr.vmem [resolvable:$true] %s22_s28  ;;  %s31_s8 = int_to_ptr.hbm [resolvable:$true] %s30_s8 }
   0x4   :  { %25 = dma.hbm_to_vmem [thread:$0]  %s21_s26, 128, %s23_s28, [#allocation3]  }
   0x5   :  { %s452_s9 = smov [#allocation5]   ;;  %s453_s11 = smov 64  }
   0x6   :  { %s32_s10 = sshll.u32 %s452_s9, 4  ;;  %s454_s12 = smov 4   ;;  %s33_s10 = int_to_ptr.vmem [resolvable:$true] %s32_s10 }
   0x7   :  { %38 = dma.hbm_to_vmem [thread:$0]  %s31_s8, 128, %s33_s10, [#allocation6], %s453_s11, %s453_s11, %s454_s12  }
   0x8   :  { %445 = dma.done.wait [#allocation3], 128  }
   0x9   :  { %446 = vsyncadd [#allocation3], 4294967168 }
   0xa   :  { %447 = dma.done.wait [#allocation6], 128  }
   0xb   :  { %448 = vsyncadd [#allocation6], 4294967168  ;;  %v346_v0 = vld [vmem:[#allocation5] sm:$0xff]  ;;  %v58_v1 = vld [vmem:[#allocation2] sm:$0xff]  ;;  %vm72_vm0 = vcmask 130048   ;;  %s455_s22 = smov [#allocation7]  }
   0xc   :  { %v354_v2 = vld [vmem:[%s565_s3 + $0x38] sm:$0xff]  ;;  %v59_v3 = vpack.c.bf16 %v58_v1, %v58_v1  ;;  %83 = vmatpush.bf16.msra.mxu0 %v346_v0  ;;  %v353_v4 = vld [vmem:[%s565_s3 + $0x30] sm:$0xff]  ;;  %v352_v5 = vld [vmem:[%s565_s3 + $0x28] sm:$0xff]  ;;  %s266_s25 = sshll.u32 %s569_s7, 4  ;;  %vm257_vm1 = vcmask 64512   ;;  %s267_s25 = int_to_ptr.hbm [resolvable:$true] %s266_s25 }
   0xd   :  { %159 = vmatpush.bf16.msra.mxu1 %v354_v2  ;;  %v351_v6 = vld [vmem:[%s565_s3 + $0x20] sm:$0xff]  ;;  %v350_v7 = vld [vmem:[%s565_s3 + $0x18] sm:$0xff]  ;;  %v349_v8 = vld [vmem:[%s565_s3 + $0x10] sm:$0xff] }
   0xe   :  { %v348_v9 = vld [vmem:[%s565_s3 + $0x8] sm:$0xff]  ;;  %v347_v10 = vld [vmem:[%s565_s3] sm:$0xff]  ;;  %v362_v11 = vld [vmem:[%s567_s5 + $0x38] sm:$0xff] }
   0xf   :  { %281 = vmatmul.msk.bf16.vlgmr.msra.gmra.mxu0 %vm72_vm0, %v59_v3  ;;  %242 = vmatpush.bf16.msra.mxu2 %v362_v11  ;;  %v361_v12 = vld [vmem:[%s567_s5 + $0x30] sm:$0xff]  ;;  %v360_v13 = vld [vmem:[%s567_s5 + $0x28] sm:$0xff]  ;;  %v359_v14 = vld [vmem:[%s567_s5 + $0x20] sm:$0xff] }
  0x10   :  { %v358_v15 = vld [vmem:[%s567_s5 + $0x18] sm:$0xff]  ;;  %v357_v16 = vld [vmem:[%s567_s5 + $0x10] sm:$0xff]  ;;  %v368_v17 = vld [vmem:[%s564_s2] ss:$0 sm:$0xff] }
  0x11   :  { %160 = vmatpush.bf16.msra.mxu1 %v353_v4  ;;  %v356_v23 = vld [vmem:[%s567_s5 + $0x8] sm:$0xff]  ;;  %v355_v24 = vld [vmem:[%s567_s5] sm:$0xff]  ;;  %s264_s5 = sshll.u32 %s455_s22, 4  ;;  %s265_s5 = int_to_ptr.vmem [resolvable:$true] %s264_s5 }
  0x12   :  { %v369_v25 = vld [vmem:[%s566_s4] ss:$0 sm:$0xff] }
  0x13   :  { %243 = vmatpush.bf16.msra.mxu2 %v361_v12  ;;  %v370_v31 = vld [vmem:[%s568_s6] ss:$0 sm:$0xff] }
  0x15   :  { %161 = vmatpush.bf16.msra.mxu1 %v352_v5 }
  0x17   :  { %244 = vmatpush.bf16.msra.mxu2 %v360_v13 }
  0x19   :  { %162 = vmatpush.bf16.msra.mxu1 %v351_v6 }
  0x1b   :  { %245 = vmatpush.bf16.msra.mxu2 %v359_v14 }
  0x1d   :  { %163 = vmatpush.bf16.msra.mxu1 %v350_v7 }
  0x1f   :  { %246 = vmatpush.bf16.msra.mxu2 %v358_v15 }
  0x21   :  { %164 = vmatpush.bf16.msra.mxu1 %v349_v8 }
  0x23   :  { %247 = vmatpush.bf16.msra.mxu2 %v357_v16 }
  0x25   :  { %165 = vmatpush.bf16.msra.mxu1 %v348_v9 }
  0x27   :  { %248 = vmatpush.bf16.msra.mxu2 %v356_v23 }
  0x29   :  { %166 = vmatpush.bf16.msra.mxu1 %v347_v10 }
  0x2b   :  { %249 = vmatpush.bf16.msra.mxu2 %v355_v24 }
  0x8c   :  { %v85_v18 = vpop.f32.mrf.mxu0 }
  0x8d   :  { %v86_v19 = vadd.f32 %v368_v17, %v85_v18 }
  0x8f   :  { %v89_v20 = vmax.f32 %v86_v19, 0.0 }
  0x91   :  { %v90_v21 = vpack.c.bf16 %v89_v20, %v89_v20 }
  0x93   :  { %167 = vmatmul.bf16.vlgmr.msra.gmra.mxu1 %v90_v21 }
  0x94   :  { %v87_v22 = vpop.f32.mrf.mxu0 }
 0x110   :  { %v168_v26 = vpop.f32.mrf.mxu1 }
 0x111   :  { %v169_v27 = vadd.f32 %v369_v25, %v168_v26 }
 0x113   :  { %v172_v28 = vmax.f32 %v169_v27, 0.0 }
 0x115   :  { %v173_v29 = vpack.c.bf16 %v172_v28, %v172_v28 }
 0x117   :  { %250 = vmatmul.bf16.vlgmr.msra.gmra.mxu2 %v173_v29 }
 0x118   :  { %v170_v30 = vpop.f32.mrf.mxu1 }
 0x19a   :  { %v251_v32 = vpop.f32.mrf.mxu2 }
 0x19b   :  { %v252_v33 = vadd.f32 %v370_v31, %v251_v32 }
 0x19d   :  { %371 = vtanh.f32 %v252_v33 }
 0x1a2   :  { %v253_v34 = vpop.f32.mrf.mxu2 }
 0x1a3   :  { %v372_v35 = vpop.eup %371 }
 0x1a4   :  { %v256_v36 = vmul.f32 2.0, %v372_v35 }
 0x1a6   :  { %258 = vst.msk [vmem:[#allocation7] sm:$0xff] %vm257_vm1, %v256_v36 }
 0x1a7   :  { %269 = dma.vmem_to_hbm [thread:$0]  %s265_s5, 128, %s267_s25, [#allocation4]  }
 0x1a8   :  { %449 = dma.done.wait [#allocation4], 128  }
 0x1a9   :  { %450 = vsyncadd [#allocation4], 4294967168 }
 0x1aa   :  { %274 = vsyncpa [#allocation3], 1 }
 0x1ab   :  { %275 = vsyncpa [#allocation6], 1 }
 0x1ac   :  { %276 = vsyncpa [#allocation4], 1 }

// kernel: tpu_custom_call.1
= control target key start
LH: loop header
LB: loop body
LE: loop exit
PB: predicated region body
PF: predicated region fallthrough
CT: control target
= control target key end

     0   :  { %12 = vsyncpa [#allocation3], 0  ;;  %s562_s0 = inlined_call_operand.hbm [shape: f32[8,16], index: 0, kind: input, shape index: {}]   ;;  %s563_s1 = inlined_call_operand.hbm [shape: bf16[16,128], index: 1, kind: input, shape index: {}]   ;;  %s564_s2 = inlined_call_operand.vmem [shape: f32[1,128], index: 2, kind: input, shape index: {}]   ;;  %s565_s3 = inlined_call_operand.vmem [shape: bf16[128,128], index: 3, kind: input, shape index: {}]   ;;  %s566_s4 = inlined_call_operand.vmem [shape: f32[1,128], index: 4, kind: input, shape index: {}]   ;;  %s567_s5 = inlined_call_operand.vmem [shape: bf16[128,8], index: 5, kind: input, shape index: {}]   ;;  %s568_s6 = inlined_call_operand.vmem [shape: f32[1,8], index: 6, kind: input, shape index: {}]   ;;  %s569_s7 = inlined_call_operand.hbm [shape: f32[8,8], index: 7, kind: output, shape index: {}]  }
   0x1   :  { %13 = vsyncpa [#allocation6], 0 }
   0x2   :  { %14 = vsyncpa [#allocation4], 0  ;;  %s20_s26 = sshll.u32 %s562_s0, 4  ;;  %s451_s27 = smov [#allocation2]   ;;  %s21_s26 = int_to_ptr.hbm [resolvable:$true] %s20_s26 }
   0x3   :  { %s22_s28 = sshll.u32 %s451_s27, 4  ;;  %s30_s8 = sshll.u32 %s563_s1, 4  ;;  %s23_s28 = int_to_ptr.vmem [resolvable:$true] %s22_s28  ;;  %s31_s8 = int_to_ptr.hbm [resolvable:$true] %s30_s8 }
   0x4   :  { %25 = dma.hbm_to_vmem [thread:$0]  %s21_s26, 128, %s23_s28, [#allocation3]  }
   0x5   :  { %s452_s9 = smov [#allocation5]   ;;  %s453_s11 = smov 64  }
   0x6   :  { %s32_s10 = sshll.u32 %s452_s9, 4  ;;  %s454_s12 = smov 4   ;;  %s33_s10 = int_to_ptr.vmem [resolvable:$true] %s32_s10 }
   0x7   :  { %38 = dma.hbm_to_vmem [thread:$0]  %s31_s8, 128, %s33_s10, [#allocation6], %s453_s11, %s453_s11, %s454_s12  }
   0x8   :  { %445 = dma.done.wait [#allocation3], 128  }
   0x9   :  { %446 = vsyncadd [#allocation3], 4294967168 }
   0xa   :  { %447 = dma.done.wait [#allocation6], 128  }
   0xb   :  { %448 = vsyncadd [#allocation6], 4294967168  ;;  %v346_v0 = vld [vmem:[#allocation5] sm:$0xff]  ;;  %v58_v1 = vld [vmem:[#allocation2] sm:$0xff]  ;;  %vm72_vm0 = vcmask 130048   ;;  %s455_s22 = smov [#allocation7]  }
   0xc   :  { %v354_v2 = vld [vmem:[%s565_s3 + $0x38] sm:$0xff]  ;;  %v59_v3 = vpack.c.bf16 %v58_v1, %v58_v1  ;;  %83 = vmatpush.bf16.msra.mxu0 %v346_v0  ;;  %v353_v4 = vld [vmem:[%s565_s3 + $0x30] sm:$0xff]  ;;  %v352_v5 = vld [vmem:[%s565_s3 + $0x28] sm:$0xff]  ;;  %s266_s25 = sshll.u32 %s569_s7, 4  ;;  %vm257_vm1 = vcmask 64512   ;;  %s267_s25 = int_to_ptr.hbm [resolvable:$true] %s266_s25 }
   0xd   :  { %159 = vmatpush.bf16.msra.mxu1 %v354_v2  ;;  %v351_v6 = vld [vmem:[%s565_s3 + $0x20] sm:$0xff]  ;;  %v350_v7 = vld [vmem:[%s565_s3 + $0x18] sm:$0xff]  ;;  %v349_v8 = vld [vmem:[%s565_s3 + $0x10] sm:$0xff] }
   0xe   :  { %v348_v9 = vld [vmem:[%s565_s3 + $0x8] sm:$0xff]  ;;  %v347_v10 = vld [vmem:[%s565_s3] sm:$0xff]  ;;  %v362_v11 = vld [vmem:[%s567_s5 + $0x38] sm:$0xff] }
   0xf   :  { %281 = vmatmul.msk.bf16.vlgmr.msra.gmra.mxu0 %vm72_vm0, %v59_v3  ;;  %242 = vmatpush.bf16.msra.mxu2 %v362_v11  ;;  %v361_v12 = vld [vmem:[%s567_s5 + $0x30] sm:$0xff]  ;;  %v360_v13 = vld [vmem:[%s567_s5 + $0x28] sm:$0xff]  ;;  %v359_v14 = vld [vmem:[%s567_s5 + $0x20] sm:$0xff] }
  0x10   :  { %v358_v15 = vld [vmem:[%s567_s5 + $0x18] sm:$0xff]  ;;  %v357_v16 = vld [vmem:[%s567_s5 + $0x10] sm:$0xff]  ;;  %v368_v17 = vld [vmem:[%s564_s2] ss:$0 sm:$0xff] }
  0x11   :  { %160 = vmatpush.bf16.msra.mxu1 %v353_v4  ;;  %v356_v23 = vld [vmem:[%s567_s5 + $0x8] sm:$0xff]  ;;  %v355_v24 = vld [vmem:[%s567_s5] sm:$0xff]  ;;  %s264_s5 = sshll.u32 %s455_s22, 4  ;;  %s265_s5 = int_to_ptr.vmem [resolvable:$true] %s264_s5 }
  0x12   :  { %v369_v25 = vld [vmem:[%s566_s4] ss:$0 sm:$0xff] }
  0x13   :  { %243 = vmatpush.bf16.msra.mxu2 %v361_v12  ;;  %v370_v31 = vld [vmem:[%s568_s6] ss:$0 sm:$0xff] }
  0x15   :  { %161 = vmatpush.bf16.msra.mxu1 %v352_v5 }
  0x17   :  { %244 = vmatpush.bf16.msra.mxu2 %v360_v13 }
  0x19   :  { %162 = vmatpush.bf16.msra.mxu1 %v351_v6 }
  0x1b   :  { %245 = vmatpush.bf16.msra.mxu2 %v359_v14 }
  0x1d   :  { %163 = vmatpush.bf16.msra.mxu1 %v350_v7 }
  0x1f   :  { %246 = vmatpush.bf16.msra.mxu2 %v358_v15 }
  0x21   :  { %164 = vmatpush.bf16.msra.mxu1 %v349_v8 }
  0x23   :  { %247 = vmatpush.bf16.msra.mxu2 %v357_v16 }
  0x25   :  { %165 = vmatpush.bf16.msra.mxu1 %v348_v9 }
  0x27   :  { %248 = vmatpush.bf16.msra.mxu2 %v356_v23 }
  0x29   :  { %166 = vmatpush.bf16.msra.mxu1 %v347_v10 }
  0x2b   :  { %249 = vmatpush.bf16.msra.mxu2 %v355_v24 }
  0x8c   :  { %v85_v18 = vpop.f32.mrf.mxu0 }
  0x8d   :  { %v86_v19 = vadd.f32 %v368_v17, %v85_v18 }
  0x8f   :  { %v89_v20 = vmax.f32 %v86_v19, 0.0 }
  0x91   :  { %v90_v21 = vpack.c.bf16 %v89_v20, %v89_v20 }
  0x93   :  { %167 = vmatmul.bf16.vlgmr.msra.gmra.mxu1 %v90_v21 }
  0x94   :  { %v87_v22 = vpop.f32.mrf.mxu0 }
 0x110   :  { %v168_v26 = vpop.f32.mrf.mxu1 }
 0x111   :  { %v169_v27 = vadd.f32 %v369_v25, %v168_v26 }
 0x113   :  { %v172_v28 = vmax.f32 %v169_v27, 0.0 }
 0x115   :  { %v173_v29 = vpack.c.bf16 %v172_v28, %v172_v28 }
 0x117   :  { %250 = vmatmul.bf16.vlgmr.msra.gmra.mxu2 %v173_v29 }
 0x118   :  { %v170_v30 = vpop.f32.mrf.mxu1 }
 0x19a   :  { %v251_v32 = vpop.f32.mrf.mxu2 }
 0x19b   :  { %v252_v33 = vadd.f32 %v370_v31, %v251_v32 }
 0x19d   :  { %371 = vtanh.f32 %v252_v33 }
 0x1a2   :  { %v253_v34 = vpop.f32.mrf.mxu2 }
 0x1a3   :  { %v372_v35 = vpop.eup %371 }
 0x1a4   :  { %v256_v36 = vmul.f32 2.0, %v372_v35 }
 0x1a6   :  { %258 = vst.msk [vmem:[#allocation7] sm:$0xff] %vm257_vm1, %v256_v36 }
 0x1a7   :  { %269 = dma.vmem_to_hbm [thread:$0]  %s265_s5, 128, %s267_s25, [#allocation4]  }
 0x1a8   :  { %449 = dma.done.wait [#allocation4], 128  }
 0x1a9   :  { %450 = vsyncadd [#allocation4], 4294967168 }
 0x1aa   :  { %274 = vsyncpa [#allocation3], 1 }
 0x1ab   :  { %275 = vsyncpa [#allocation6], 1 }
 0x1ac   :  { %276 = vsyncpa [#allocation4], 1 }

</bundles_post_ra>
